<compile_context>
chip_gen: v7x
topology: tpu7x:2x2x1
jax: 0.10.0
libtpu: 0.0.40
codegen_flags: <defaults>
</compile_context>

<pallas_src>
import functools

import jax
import jax.numpy as jnp
from jax.experimental import pallas as pl
from jax.experimental.pallas import tpu as pltpu


def _cdiv(a, b):
    return -(-a // b)


def _round_up(a, b):
    return _cdiv(a, b) * b


# ----------------------------- kernels -----------------------------

def _gather_rows(tb, n_tokens, ids_ref, src_hbm, dst_ref, sem):
    """Issue `tb` id-driven row DMAs src_hbm[id] -> dst_ref[t], then wait.

    ids_ref : SMEM (N_pad,) int32   — scalar-prefetched flat token ids.
    src_hbm : HBM  (V, W)           — table (32-bit words per column).
    dst_ref : VMEM (tb, W)          — destination tile (output or scratch).
    sem     : DMA semaphore (1,)    — shared; all copies are equal-sized.
    Rows of the padded tail (base + t >= n_tokens) are skipped entirely.
    """
    base = pl.program_id(0) * tb
    tail = n_tokens % tb            # static; >0 only if the last block is partial

    def start(t):
        idx = ids_ref[base + t]
        pltpu.make_async_copy(src_hbm.at[idx], dst_ref.at[t], sem.at[0]).start()

    def wait(t):
        pltpu.make_async_copy(src_hbm.at[0], dst_ref.at[t], sem.at[0]).wait()

    for t in range(tb):             # issue every row DMA first ...
        if tail and t >= tail:      # ... guarding rows that may be padding
            pl.when(base + t < n_tokens)(functools.partial(start, t))
        else:
            start(t)
    for t in range(tb):             # ... then wait for all of them
        if tail and t >= tail:
            pl.when(base + t < n_tokens)(functools.partial(wait, t))
        else:
            wait(t)


def _gather_rows_kernel(tb, n_tokens, ids_ref, w_hbm, out_ref, sem):
    """Non-quant f32: DMA table rows straight into the (tb, D) output tile."""
    _gather_rows(tb, n_tokens, ids_ref, w_hbm, out_ref, sem)


def _gather_transform_kernel(tb, n_tokens, epilogue,
                             ids_ref, tbl_hbm, out_ref, rows_ref, sem):
    """Gather packed 32-bit rows into VMEM scratch, then expand/dequantize."""
    _gather_rows(tb, n_tokens, ids_ref, tbl_hbm, rows_ref, sem)
    epilogue(rows_ref[...], out_ref)


def _dequant_epilogue(q, rows, out_ref):
    """rows: (tb, q+1) int32. Cols [0:q] hold 4 packed int8 planes (byte j of
    word w = original column j*q + w); col q holds the f32 scaler bits.
    Four direct slice-stores — no concatenate, no (tb, D) temp."""
    p = rows[:, :q]
    scale = pltpu.bitcast(rows[:, q:q + 1], jnp.float32)      # (tb, 1)
    planes = ((p << 24) >> 24,       # byte 0  -> columns [0:q]
              (p << 16) >> 24,       # byte 1  -> columns [q:2q]
              (p << 8) >> 24,        # byte 2  -> columns [2q:3q]
              p >> 24)               # byte 3  -> columns [3q:4q]
    for j, b in enumerate(planes):
        out_ref[:, j * q:(j + 1) * q] = (
            b.astype(jnp.float32) * scale).astype(out_ref.dtype)


def _bf16_unpack_epilogue(q, rows, out_ref):
    """rows: (tb, q) int32; low 16 bits = bf16 bits of col j, high 16 bits =
    bf16 bits of col j+q.  bf16 bits << 16 are the exact f32 bit pattern."""
    lo = pltpu.bitcast(rows << 16, jnp.float32)                # columns [0:q]
    hi = pltpu.bitcast((rows >> 16) << 16, jnp.float32)        # columns [q:2q]
    out_ref[:, :q] = lo.astype(out_ref.dtype)
    out_ref[:, q:] = hi.astype(out_ref.dtype)


# --------------------- weight-load-time packing ---------------------

def _pack_int8_table(w_int8, scaler):
    """(V, D) int8 + (V,) f32 -> (V, D//4 + 1) int32.

    Byte j of word w = column j*(D//4) + w; the last column is the per-row
    scaler bitcast to int32 (so data + scale arrive in ONE DMA per row).
    In production this runs once at weight-load time."""
    V, D = w_int8.shape
    q = D // 4
    u = w_int8.astype(jnp.int32) & 0xFF                        # zero-extended bytes
    packed = (u[:, 0 * q:1 * q]
              | (u[:, 1 * q:2 * q] << 8)
              | (u[:, 2 * q:3 * q] << 16)
              | (u[:, 3 * q:4 * q] << 24))
    scale_bits = jax.lax.bitcast_convert_type(
        scaler.reshape(V, 1).astype(jnp.float32), jnp.int32)
    return jnp.concatenate([packed, scale_bits], axis=1)


def _pack_bf16_table(w_bf16):
    """(V, D) bf16 -> (V, D//2) int32: low 16 bits = col j, high 16 = col j+q."""
    V, D = w_bf16.shape
    q = D // 2
    u = jax.lax.bitcast_convert_type(w_bf16, jnp.uint16).astype(jnp.uint32)
    packed = u[:, :q] | (u[:, q:] << 16)
    return jax.lax.bitcast_convert_type(packed, jnp.int32)


# ----------------------------- wrapper -----------------------------

def embedding_forward(x, weight, weight_scaler=None, *, token_block=256,
                      out_dtype=None):
    """Equivalent of Embedding.forward: F.embedding(x, weight [* scaler])."""
    quant = weight_scaler is not None
    V, D = weight.shape
    lead_shape = x.shape

    ids = x.reshape(-1).astype(jnp.int32)
    N = int(ids.shape[0])

    staged = True
    if quant:
        assert D % 4 == 0, "embedding_dim must be a multiple of 4 for quant path"
        out_dt = jnp.dtype(out_dtype) if out_dtype is not None else jnp.dtype(jnp.float32)
        q = D // 4
        table = _pack_int8_table(weight, weight_scaler)        # (V, q+1) int32
        epilogue = functools.partial(_dequant_epilogue, q)
        scratch_cols = q + 1
    else:
        w_dt = jnp.dtype(weight.dtype)
        if w_dt.itemsize == 4:
            # Rows are DMA'd directly into the output tile: out dtype == table dtype.
            if out_dtype is not None and jnp.dtype(out_dtype) != w_dt:
                raise ValueError("non-quant 32-bit path emits rows in the weight dtype")
            out_dt = w_dt
            table = weight
            staged = False
            epilogue = None
            scratch_cols = 0
        elif w_dt == jnp.dtype(jnp.bfloat16):
            assert D % 2 == 0, "embedding_dim must be even for the bf16 path"
            out_dt = jnp.dtype(out_dtype) if out_dtype is not None else w_dt
            q = D // 2
            table = _pack_bf16_table(weight)                   # (V, q) int32
            epilogue = functools.partial(_bf16_unpack_epilogue, q)
            scratch_cols = q
        else:
            raise ValueError(f"unsupported embedding table dtype {w_dt}")

    # Token block: sublane-aligned for the output dtype, capped so the grid
    # has >= 2 blocks when possible (feeds both v7x TensorCores).
    row_align = 8 if out_dt.itemsize == 4 else 16
    tb = min(int(token_block), _round_up(_cdiv(N, 2), row_align))
    tb = _round_up(max(tb, row_align), row_align)
    n_blocks = _cdiv(N, tb)
    N_pad = n_blocks * tb
    if N_pad != N:
        ids = jnp.pad(ids, (0, N_pad - N))      # padded ids never gathered (pl.when guard)

    if staged:
        kernel = functools.partial(_gather_transform_kernel, tb, N, epilogue)
        scratch_shapes = [pltpu.VMEM((tb, scratch_cols), jnp.int32),
                          pltpu.SemaphoreType.DMA((1,))]
    else:
        kernel = functools.partial(_gather_rows_kernel, tb, N)
        scratch_shapes = [pltpu.SemaphoreType.DMA((1,))]

    # VMEM footprint: double-buffered output tile + gather scratch.  Only
    # raise the scoped limit if the conservative default could be exceeded
    # (keep headroom; on v7x the physical budget is 64 MiB).
    footprint = 2 * tb * D * out_dt.itemsize + tb * scratch_cols * 4
    vmem_limit = footprint + (8 << 20) if footprint > (12 << 20) else None

    out_flat = pl.pallas_call(
        kernel,
        out_shape=jax.ShapeDtypeStruct((N_pad, D), out_dt),
        grid_spec=pltpu.PrefetchScalarGridSpec(
            num_scalar_prefetch=1,
            grid=(n_blocks,),
            in_specs=[pl.BlockSpec(memory_space=pl.ANY)],      # table stays in HBM
            out_specs=pl.BlockSpec((tb, D), lambda i, ids_ref: (i, 0)),
            scratch_shapes=scratch_shapes,
        ),
        compiler_params=pltpu.CompilerParams(
            dimension_semantics=("parallel",),                 # helps v7x; ~neutral on v6e
            vmem_limit_bytes=vmem_limit),
    )(ids, table)

    if N_pad != N:
        out_flat = out_flat[:N]
    return out_flat.reshape(*lead_shape, D)


# ------------------------------- test -------------------------------

if __name__ == "__main__":
    key = jax.random.PRNGKey(0)
    k1, k2, k3, k4, k5 = jax.random.split(key, 5)

    B, S = 2, 8          # batch, sequence
    V, D = 256, 128      # num_embeddings, embedding_dim

    x = jax.random.randint(k1, (B, S), 0, V, dtype=jnp.int32)
    flat = x.reshape(-1)

    # ---- quant=False, float32 table: rows DMA'd straight into the output ----
    w_f32 = jax.random.normal(k2, (V, D), dtype=jnp.float32)
    out = jax.block_until_ready(embedding_forward(x, w_f32, token_block=8))
    ref = jnp.take(w_f32, flat, axis=0).reshape(B, S, D)
    assert out.shape == (B, S, D) and out.dtype == jnp.float32
    assert jnp.allclose(out, ref), "non-quant f32 embedding mismatch"

    # ---- quant=True: int8 table with scaler folded into the packed rows ----
    w_i8 = jax.random.randint(k3, (V, D), -128, 128, dtype=jnp.int32).astype(jnp.int8)
    scaler = jax.random.uniform(k4, (V,), dtype=jnp.float32, minval=0.01, maxval=0.1)
    out_q = jax.block_until_ready(embedding_forward(x, w_i8, scaler))
    ref_q = jnp.take(w_i8.astype(jnp.float32) * scaler[:, None], flat,
                     axis=0).reshape(B, S, D)
    assert out_q.shape == (B, S, D) and out_q.dtype == jnp.float32
    assert jnp.allclose(out_q, ref_q, atol=1e-6), "quant embedding mismatch"

    # ---- quant=True with bf16 output (halved writeback, v5e-friendly) ----
    out_qb = jax.block_until_ready(
        embedding_forward(x, w_i8, scaler, out_dtype=jnp.bfloat16))
    assert out_qb.dtype == jnp.bfloat16
    assert jnp.allclose(out_qb.astype(jnp.float32), ref_q, atol=1e-2, rtol=1e-2), \
        "quant bf16-output embedding mismatch"

    # ---- quant=False, bf16 table (packed 2 x bf16 -> int32 at load time) ----
    w_bf16 = w_f32.astype(jnp.bfloat16)
    out_b = jax.block_until_ready(embedding_forward(x, w_bf16))
    ref_b = jnp.take(w_bf16, flat, axis=0).reshape(B, S, D)
    assert out_b.dtype == jnp.bfloat16
    assert jnp.allclose(out_b.astype(jnp.float32), ref_b.astype(jnp.float32)), \
        "non-quant bf16 embedding mismatch"

    # ---- ragged token count (exercises the guarded padded tail block) ----
    x3 = jax.random.randint(k5, (4, 5), 0, V, dtype=jnp.int32)   # N=20, tb=8 -> pad to 24
    out3 = jax.block_until_ready(embedding_forward(x3, w_f32, token_block=8))
    ref3 = jnp.take(w_f32, x3.reshape(-1), axis=0).reshape(4, 5, D)
    assert jnp.allclose(out3, ref3), "ragged embedding mismatch"

    print("KERNEL_OK")
</pallas_src>

<mosaic_0001>
module attributes {stable_mosaic.version = 11 : i64} {
  func.func @_gather_rows_kernel(%arg0: i32, %arg1: memref<16xi32, #tpu.memory_space<smem>>, %arg2: memref<256x128xf32, #tpu.memory_space<any>>, %arg3: memref<8x128xf32, #tpu.memory_space<vmem>>, %arg4: memref<1x!tpu.dma_semaphore, #tpu.memory_space<semaphore_mem>>) attributes {dimension_semantics = [#tpu.dimension_semantics<parallel>], iteration_bounds = array<i64: 2>, scalar_prefetch = 1 : i64, scratch_operands = 1 : i64, tpu.core_type = #tpu.core_type<tc>, window_params = [{}, {transform_indices = @transform_1, window_bounds = array<i64: 8, 128>}]} {
    %c8_i32 = arith.constant 8 : i32
    %0 = arith.muli %arg0, %c8_i32 : i32
    %c0_i32 = arith.constant 0 : i32
    %1 = arith.addi %0, %c0_i32 : i32
    %2 = arith.index_cast %1 : i32 to index
    %3 = memref.load %arg1[%2] : memref<16xi32, #tpu.memory_space<smem>>
    %c0_i32_0 = arith.constant 0 : i32
    %c0_i32_1 = arith.constant 0 : i32
    %c0_i32_2 = arith.constant 0 : i32
    %4 = tpu.memref_slice %arg2[%3, %c0_i32_2] : memref<256x128xf32, #tpu.memory_space<any>> -> memref<1x128xf32, #tpu.memory_space<any>>
    %5 = tpu.memref_squeeze %4 : memref<1x128xf32, #tpu.memory_space<any>> -> memref<128xf32, #tpu.memory_space<any>>
    %c0_i32_3 = arith.constant 0 : i32
    %6 = tpu.memref_slice %arg3[%c0_i32_0, %c0_i32_3] : memref<8x128xf32, #tpu.memory_space<vmem>> -> memref<1x128xf32, #tpu.memory_space<vmem>>
    %7 = tpu.memref_squeeze %6 : memref<1x128xf32, #tpu.memory_space<vmem>> -> memref<128xf32, #tpu.memory_space<vmem>>
    %8 = tpu.memref_slice %arg4[%c0_i32_1] : memref<1x!tpu.dma_semaphore, #tpu.memory_space<semaphore_mem>> -> memref<1x!tpu.dma_semaphore, #tpu.memory_space<semaphore_mem>>
    %9 = tpu.memref_squeeze %8 : memref<1x!tpu.dma_semaphore, #tpu.memory_space<semaphore_mem>> -> memref<!tpu.dma_semaphore, #tpu.memory_space<semaphore_mem>>
    tpu.enqueue_dma source(%5 : memref<128xf32, #tpu.memory_space<any>>) target(%7 : memref<128xf32, #tpu.memory_space<vmem>>) target_semaphore(%9 : memref<!tpu.dma_semaphore, #tpu.memory_space<semaphore_mem>>)
    %c1_i32 = arith.constant 1 : i32
    %10 = arith.addi %0, %c1_i32 : i32
    %11 = arith.index_cast %10 : i32 to index
    %12 = memref.load %arg1[%11] : memref<16xi32, #tpu.memory_space<smem>>
    %c1_i32_4 = arith.constant 1 : i32
    %c0_i32_5 = arith.constant 0 : i32
    %c0_i32_6 = arith.constant 0 : i32
    %13 = tpu.memref_slice %arg2[%12, %c0_i32_6] : memref<256x128xf32, #tpu.memory_space<any>> -> memref<1x128xf32, #tpu.memory_space<any>>
    %14 = tpu.memref_squeeze %13 : memref<1x128xf32, #tpu.memory_space<any>> -> memref<128xf32, #tpu.memory_space<any>>
    %c0_i32_7 = arith.constant 0 : i32
    %15 = tpu.memref_slice %arg3[%c1_i32_4, %c0_i32_7] : memref<8x128xf32, #tpu.memory_space<vmem>> -> memref<1x128xf32, #tpu.memory_space<vmem>>
    %16 = tpu.memref_squeeze %15 : memref<1x128xf32, #tpu.memory_space<vmem>> -> memref<128xf32, #tpu.memory_space<vmem>>
    %17 = tpu.memref_slice %arg4[%c0_i32_5] : memref<1x!tpu.dma_semaphore, #tpu.memory_space<semaphore_mem>> -> memref<1x!tpu.dma_semaphore, #tpu.memory_space<semaphore_mem>>
    %18 = tpu.memref_squeeze %17 : memref<1x!tpu.dma_semaphore, #tpu.memory_space<semaphore_mem>> -> memref<!tpu.dma_semaphore, #tpu.memory_space<semaphore_mem>>
    tpu.enqueue_dma source(%14 : memref<128xf32, #tpu.memory_space<any>>) target(%16 : memref<128xf32, #tpu.memory_space<vmem>>) target_semaphore(%18 : memref<!tpu.dma_semaphore, #tpu.memory_space<semaphore_mem>>)
    %c2_i32 = arith.constant 2 : i32
    %19 = arith.addi %0, %c2_i32 : i32
    %20 = arith.index_cast %19 : i32 to index
    %21 = memref.load %arg1[%20] : memref<16xi32, #tpu.memory_space<smem>>
    %c2_i32_8 = arith.constant 2 : i32
    %c0_i32_9 = arith.constant 0 : i32
    %c0_i32_10 = arith.constant 0 : i32
    %22 = tpu.memref_slice %arg2[%21, %c0_i32_10] : memref<256x128xf32, #tpu.memory_space<any>> -> memref<1x128xf32, #tpu.memory_space<any>>
    %23 = tpu.memref_squeeze %22 : memref<1x128xf32, #tpu.memory_space<any>> -> memref<128xf32, #tpu.memory_space<any>>
    %c0_i32_11 = arith.constant 0 : i32
    %24 = tpu.memref_slice %arg3[%c2_i32_8, %c0_i32_11] : memref<8x128xf32, #tpu.memory_space<vmem>> -> memref<1x128xf32, #tpu.memory_space<vmem>>
    %25 = tpu.memref_squeeze %24 : memref<1x128xf32, #tpu.memory_space<vmem>> -> memref<128xf32, #tpu.memory_space<vmem>>
    %26 = tpu.memref_slice %arg4[%c0_i32_9] : memref<1x!tpu.dma_semaphore, #tpu.memory_space<semaphore_mem>> -> memref<1x!tpu.dma_semaphore, #tpu.memory_space<semaphore_mem>>
    %27 = tpu.memref_squeeze %26 : memref<1x!tpu.dma_semaphore, #tpu.memory_space<semaphore_mem>> -> memref<!tpu.dma_semaphore, #tpu.memory_space<semaphore_mem>>
    tpu.enqueue_dma source(%23 : memref<128xf32, #tpu.memory_space<any>>) target(%25 : memref<128xf32, #tpu.memory_space<vmem>>) target_semaphore(%27 : memref<!tpu.dma_semaphore, #tpu.memory_space<semaphore_mem>>)
    %c3_i32 = arith.constant 3 : i32
    %28 = arith.addi %0, %c3_i32 : i32
    %29 = arith.index_cast %28 : i32 to index
    %30 = memref.load %arg1[%29] : memref<16xi32, #tpu.memory_space<smem>>
    %c3_i32_12 = arith.constant 3 : i32
    %c0_i32_13 = arith.constant 0 : i32
    %c0_i32_14 = arith.constant 0 : i32
    %31 = tpu.memref_slice %arg2[%30, %c0_i32_14] : memref<256x128xf32, #tpu.memory_space<any>> -> memref<1x128xf32, #tpu.memory_space<any>>
    %32 = tpu.memref_squeeze %31 : memref<1x128xf32, #tpu.memory_space<any>> -> memref<128xf32, #tpu.memory_space<any>>
    %c0_i32_15 = arith.constant 0 : i32
    %33 = tpu.memref_slice %arg3[%c3_i32_12, %c0_i32_15] : memref<8x128xf32, #tpu.memory_space<vmem>> -> memref<1x128xf32, #tpu.memory_space<vmem>>
    %34 = tpu.memref_squeeze %33 : memref<1x128xf32, #tpu.memory_space<vmem>> -> memref<128xf32, #tpu.memory_space<vmem>>
    %35 = tpu.memref_slice %arg4[%c0_i32_13] : memref<1x!tpu.dma_semaphore, #tpu.memory_space<semaphore_mem>> -> memref<1x!tpu.dma_semaphore, #tpu.memory_space<semaphore_mem>>
    %36 = tpu.memref_squeeze %35 : memref<1x!tpu.dma_semaphore, #tpu.memory_space<semaphore_mem>> -> memref<!tpu.dma_semaphore, #tpu.memory_space<semaphore_mem>>
    tpu.enqueue_dma source(%32 : memref<128xf32, #tpu.memory_space<any>>) target(%34 : memref<128xf32, #tpu.memory_space<vmem>>) target_semaphore(%36 : memref<!tpu.dma_semaphore, #tpu.memory_space<semaphore_mem>>)
    %c4_i32 = arith.constant 4 : i32
    %37 = arith.addi %0, %c4_i32 : i32
    %38 = arith.index_cast %37 : i32 to index
    %39 = memref.load %arg1[%38] : memref<16xi32, #tpu.memory_space<smem>>
    %c4_i32_16 = arith.constant 4 : i32
    %c0_i32_17 = arith.constant 0 : i32
    %c0_i32_18 = arith.constant 0 : i32
    %40 = tpu.memref_slice %arg2[%39, %c0_i32_18] : memref<256x128xf32, #tpu.memory_space<any>> -> memref<1x128xf32, #tpu.memory_space<any>>
    %41 = tpu.memref_squeeze %40 : memref<1x128xf32, #tpu.memory_space<any>> -> memref<128xf32, #tpu.memory_space<any>>
    %c0_i32_19 = arith.constant 0 : i32
    %42 = tpu.memref_slice %arg3[%c4_i32_16, %c0_i32_19] : memref<8x128xf32, #tpu.memory_space<vmem>> -> memref<1x128xf32, #tpu.memory_space<vmem>>
    %43 = tpu.memref_squeeze %42 : memref<1x128xf32, #tpu.memory_space<vmem>> -> memref<128xf32, #tpu.memory_space<vmem>>
    %44 = tpu.memref_slice %arg4[%c0_i32_17] : memref<1x!tpu.dma_semaphore, #tpu.memory_space<semaphore_mem>> -> memref<1x!tpu.dma_semaphore, #tpu.memory_space<semaphore_mem>>
    %45 = tpu.memref_squeeze %44 : memref<1x!tpu.dma_semaphore, #tpu.memory_space<semaphore_mem>> -> memref<!tpu.dma_semaphore, #tpu.memory_space<semaphore_mem>>
    tpu.enqueue_dma source(%41 : memref<128xf32, #tpu.memory_space<any>>) target(%43 : memref<128xf32, #tpu.memory_space<vmem>>) target_semaphore(%45 : memref<!tpu.dma_semaphore, #tpu.memory_space<semaphore_mem>>)
    %c5_i32 = arith.constant 5 : i32
    %46 = arith.addi %0, %c5_i32 : i32
    %47 = arith.index_cast %46 : i32 to index
    %48 = memref.load %arg1[%47] : memref<16xi32, #tpu.memory_space<smem>>
    %c5_i32_20 = arith.constant 5 : i32
    %c0_i32_21 = arith.constant 0 : i32
    %c0_i32_22 = arith.constant 0 : i32
    %49 = tpu.memref_slice %arg2[%48, %c0_i32_22] : memref<256x128xf32, #tpu.memory_space<any>> -> memref<1x128xf32, #tpu.memory_space<any>>
    %50 = tpu.memref_squeeze %49 : memref<1x128xf32, #tpu.memory_space<any>> -> memref<128xf32, #tpu.memory_space<any>>
    %c0_i32_23 = arith.constant 0 : i32
    %51 = tpu.memref_slice %arg3[%c5_i32_20, %c0_i32_23] : memref<8x128xf32, #tpu.memory_space<vmem>> -> memref<1x128xf32, #tpu.memory_space<vmem>>
    %52 = tpu.memref_squeeze %51 : memref<1x128xf32, #tpu.memory_space<vmem>> -> memref<128xf32, #tpu.memory_space<vmem>>
    %53 = tpu.memref_slice %arg4[%c0_i32_21] : memref<1x!tpu.dma_semaphore, #tpu.memory_space<semaphore_mem>> -> memref<1x!tpu.dma_semaphore, #tpu.memory_space<semaphore_mem>>
    %54 = tpu.memref_squeeze %53 : memref<1x!tpu.dma_semaphore, #tpu.memory_space<semaphore_mem>> -> memref<!tpu.dma_semaphore, #tpu.memory_space<semaphore_mem>>
    tpu.enqueue_dma source(%50 : memref<128xf32, #tpu.memory_space<any>>) target(%52 : memref<128xf32, #tpu.memory_space<vmem>>) target_semaphore(%54 : memref<!tpu.dma_semaphore, #tpu.memory_space<semaphore_mem>>)
    %c6_i32 = arith.constant 6 : i32
    %55 = arith.addi %0, %c6_i32 : i32
    %56 = arith.index_cast %55 : i32 to index
    %57 = memref.load %arg1[%56] : memref<16xi32, #tpu.memory_space<smem>>
    %c6_i32_24 = arith.constant 6 : i32
    %c0_i32_25 = arith.constant 0 : i32
    %c0_i32_26 = arith.constant 0 : i32
    %58 = tpu.memref_slice %arg2[%57, %c0_i32_26] : memref<256x128xf32, #tpu.memory_space<any>> -> memref<1x128xf32, #tpu.memory_space<any>>
    %59 = tpu.memref_squeeze %58 : memref<1x128xf32, #tpu.memory_space<any>> -> memref<128xf32, #tpu.memory_space<any>>
    %c0_i32_27 = arith.constant 0 : i32
    %60 = tpu.memref_slice %arg3[%c6_i32_24, %c0_i32_27] : memref<8x128xf32, #tpu.memory_space<vmem>> -> memref<1x128xf32, #tpu.memory_space<vmem>>
    %61 = tpu.memref_squeeze %60 : memref<1x128xf32, #tpu.memory_space<vmem>> -> memref<128xf32, #tpu.memory_space<vmem>>
    %62 = tpu.memref_slice %arg4[%c0_i32_25] : memref<1x!tpu.dma_semaphore, #tpu.memory_space<semaphore_mem>> -> memref<1x!tpu.dma_semaphore, #tpu.memory_space<semaphore_mem>>
    %63 = tpu.memref_squeeze %62 : memref<1x!tpu.dma_semaphore, #tpu.memory_space<semaphore_mem>> -> memref<!tpu.dma_semaphore, #tpu.memory_space<semaphore_mem>>
    tpu.enqueue_dma source(%59 : memref<128xf32, #tpu.memory_space<any>>) target(%61 : memref<128xf32, #tpu.memory_space<vmem>>) target_semaphore(%63 : memref<!tpu.dma_semaphore, #tpu.memory_space<semaphore_mem>>)
    %c7_i32 = arith.constant 7 : i32
    %64 = arith.addi %0, %c7_i32 : i32
    %65 = arith.index_cast %64 : i32 to index
    %66 = memref.load %arg1[%65] : memref<16xi32, #tpu.memory_space<smem>>
    %c7_i32_28 = arith.constant 7 : i32
    %c0_i32_29 = arith.constant 0 : i32
    %c0_i32_30 = arith.constant 0 : i32
    %67 = tpu.memref_slice %arg2[%66, %c0_i32_30] : memref<256x128xf32, #tpu.memory_space<any>> -> memref<1x128xf32, #tpu.memory_space<any>>
    %68 = tpu.memref_squeeze %67 : memref<1x128xf32, #tpu.memory_space<any>> -> memref<128xf32, #tpu.memory_space<any>>
    %c0_i32_31 = arith.constant 0 : i32
    %69 = tpu.memref_slice %arg3[%c7_i32_28, %c0_i32_31] : memref<8x128xf32, #tpu.memory_space<vmem>> -> memref<1x128xf32, #tpu.memory_space<vmem>>
    %70 = tpu.memref_squeeze %69 : memref<1x128xf32, #tpu.memory_space<vmem>> -> memref<128xf32, #tpu.memory_space<vmem>>
    %71 = tpu.memref_slice %arg4[%c0_i32_29] : memref<1x!tpu.dma_semaphore, #tpu.memory_space<semaphore_mem>> -> memref<1x!tpu.dma_semaphore, #tpu.memory_space<semaphore_mem>>
    %72 = tpu.memref_squeeze %71 : memref<1x!tpu.dma_semaphore, #tpu.memory_space<semaphore_mem>> -> memref<!tpu.dma_semaphore, #tpu.memory_space<semaphore_mem>>
    tpu.enqueue_dma source(%68 : memref<128xf32, #tpu.memory_space<any>>) target(%70 : memref<128xf32, #tpu.memory_space<vmem>>) target_semaphore(%72 : memref<!tpu.dma_semaphore, #tpu.memory_space<semaphore_mem>>)
    %c0_i32_32 = arith.constant 0 : i32
    %c0_i32_33 = arith.constant 0 : i32
    %c0_i32_34 = arith.constant 0 : i32
    %c0_i32_35 = arith.constant 0 : i32
    %73 = tpu.memref_slice %arg2[%c0_i32_32, %c0_i32_35] : memref<256x128xf32, #tpu.memory_space<any>> -> memref<1x128xf32, #tpu.memory_space<any>>
    %74 = tpu.memref_squeeze %73 : memref<1x128xf32, #tpu.memory_space<any>> -> memref<128xf32, #tpu.memory_space<any>>
    %c0_i32_36 = arith.constant 0 : i32
    %75 = tpu.memref_slice %arg3[%c0_i32_33, %c0_i32_36] : memref<8x128xf32, #tpu.memory_space<vmem>> -> memref<1x128xf32, #tpu.memory_space<vmem>>
    %76 = tpu.memref_squeeze %75 : memref<1x128xf32, #tpu.memory_space<vmem>> -> memref<128xf32, #tpu.memory_space<vmem>>
    %77 = tpu.memref_slice %arg4[%c0_i32_34] : memref<1x!tpu.dma_semaphore, #tpu.memory_space<semaphore_mem>> -> memref<1x!tpu.dma_semaphore, #tpu.memory_space<semaphore_mem>>
    %78 = tpu.memref_squeeze %77 : memref<1x!tpu.dma_semaphore, #tpu.memory_space<semaphore_mem>> -> memref<!tpu.dma_semaphore, #tpu.memory_space<semaphore_mem>>
    tpu.wait_dma2 semaphore(%78 : memref<!tpu.dma_semaphore, #tpu.memory_space<semaphore_mem>>) src(%74 : memref<128xf32, #tpu.memory_space<any>>) dst(%76 : memref<128xf32, #tpu.memory_space<vmem>>)
    %c0_i32_37 = arith.constant 0 : i32
    %c1_i32_38 = arith.constant 1 : i32
    %c0_i32_39 = arith.constant 0 : i32
    %c0_i32_40 = arith.constant 0 : i32
    %79 = tpu.memref_slice %arg2[%c0_i32_37, %c0_i32_40] : memref<256x128xf32, #tpu.memory_space<any>> -> memref<1x128xf32, #tpu.memory_space<any>>
    %80 = tpu.memref_squeeze %79 : memref<1x128xf32, #tpu.memory_space<any>> -> memref<128xf32, #tpu.memory_space<any>>
    %c0_i32_41 = arith.constant 0 : i32
    %81 = tpu.memref_slice %arg3[%c1_i32_38, %c0_i32_41] : memref<8x128xf32, #tpu.memory_space<vmem>> -> memref<1x128xf32, #tpu.memory_space<vmem>>
    %82 = tpu.memref_squeeze %81 : memref<1x128xf32, #tpu.memory_space<vmem>> -> memref<128xf32, #tpu.memory_space<vmem>>
    %83 = tpu.memref_slice %arg4[%c0_i32_39] : memref<1x!tpu.dma_semaphore, #tpu.memory_space<semaphore_mem>> -> memref<1x!tpu.dma_semaphore, #tpu.memory_space<semaphore_mem>>
    %84 = tpu.memref_squeeze %83 : memref<1x!tpu.dma_semaphore, #tpu.memory_space<semaphore_mem>> -> memref<!tpu.dma_semaphore, #tpu.memory_space<semaphore_mem>>
    tpu.wait_dma2 semaphore(%84 : memref<!tpu.dma_semaphore, #tpu.memory_space<semaphore_mem>>) src(%80 : memref<128xf32, #tpu.memory_space<any>>) dst(%82 : memref<128xf32, #tpu.memory_space<vmem>>)
    %c0_i32_42 = arith.constant 0 : i32
    %c2_i32_43 = arith.constant 2 : i32
    %c0_i32_44 = arith.constant 0 : i32
    %c0_i32_45 = arith.constant 0 : i32
    %85 = tpu.memref_slice %arg2[%c0_i32_42, %c0_i32_45] : memref<256x128xf32, #tpu.memory_space<any>> -> memref<1x128xf32, #tpu.memory_space<any>>
    %86 = tpu.memref_squeeze %85 : memref<1x128xf32, #tpu.memory_space<any>> -> memref<128xf32, #tpu.memory_space<any>>
    %c0_i32_46 = arith.constant 0 : i32
    %87 = tpu.memref_slice %arg3[%c2_i32_43, %c0_i32_46] : memref<8x128xf32, #tpu.memory_space<vmem>> -> memref<1x128xf32, #tpu.memory_space<vmem>>
    %88 = tpu.memref_squeeze %87 : memref<1x128xf32, #tpu.memory_space<vmem>> -> memref<128xf32, #tpu.memory_space<vmem>>
    %89 = tpu.memref_slice %arg4[%c0_i32_44] : memref<1x!tpu.dma_semaphore, #tpu.memory_space<semaphore_mem>> -> memref<1x!tpu.dma_semaphore, #tpu.memory_space<semaphore_mem>>
    %90 = tpu.memref_squeeze %89 : memref<1x!tpu.dma_semaphore, #tpu.memory_space<semaphore_mem>> -> memref<!tpu.dma_semaphore, #tpu.memory_space<semaphore_mem>>
    tpu.wait_dma2 semaphore(%90 : memref<!tpu.dma_semaphore, #tpu.memory_space<semaphore_mem>>) src(%86 : memref<128xf32, #tpu.memory_space<any>>) dst(%88 : memref<128xf32, #tpu.memory_space<vmem>>)
    %c0_i32_47 = arith.constant 0 : i32
    %c3_i32_48 = arith.constant 3 : i32
    %c0_i32_49 = arith.constant 0 : i32
    %c0_i32_50 = arith.constant 0 : i32
    %91 = tpu.memref_slice %arg2[%c0_i32_47, %c0_i32_50] : memref<256x128xf32, #tpu.memory_space<any>> -> memref<1x128xf32, #tpu.memory_space<any>>
    %92 = tpu.memref_squeeze %91 : memref<1x128xf32, #tpu.memory_space<any>> -> memref<128xf32, #tpu.memory_space<any>>
    %c0_i32_51 = arith.constant 0 : i32
    %93 = tpu.memref_slice %arg3[%c3_i32_48, %c0_i32_51] : memref<8x128xf32, #tpu.memory_space<vmem>> -> memref<1x128xf32, #tpu.memory_space<vmem>>
    %94 = tpu.memref_squeeze %93 : memref<1x128xf32, #tpu.memory_space<vmem>> -> memref<128xf32, #tpu.memory_space<vmem>>
    %95 = tpu.memref_slice %arg4[%c0_i32_49] : memref<1x!tpu.dma_semaphore, #tpu.memory_space<semaphore_mem>> -> memref<1x!tpu.dma_semaphore, #tpu.memory_space<semaphore_mem>>
    %96 = tpu.memref_squeeze %95 : memref<1x!tpu.dma_semaphore, #tpu.memory_space<semaphore_mem>> -> memref<!tpu.dma_semaphore, #tpu.memory_space<semaphore_mem>>
    tpu.wait_dma2 semaphore(%96 : memref<!tpu.dma_semaphore, #tpu.memory_space<semaphore_mem>>) src(%92 : memref<128xf32, #tpu.memory_space<any>>) dst(%94 : memref<128xf32, #tpu.memory_space<vmem>>)
    %c0_i32_52 = arith.constant 0 : i32
    %c4_i32_53 = arith.constant 4 : i32
    %c0_i32_54 = arith.constant 0 : i32
    %c0_i32_55 = arith.constant 0 : i32
    %97 = tpu.memref_slice %arg2[%c0_i32_52, %c0_i32_55] : memref<256x128xf32, #tpu.memory_space<any>> -> memref<1x128xf32, #tpu.memory_space<any>>
    %98 = tpu.memref_squeeze %97 : memref<1x128xf32, #tpu.memory_space<any>> -> memref<128xf32, #tpu.memory_space<any>>
    %c0_i32_56 = arith.constant 0 : i32
    %99 = tpu.memref_slice %arg3[%c4_i32_53, %c0_i32_56] : memref<8x128xf32, #tpu.memory_space<vmem>> -> memref<1x128xf32, #tpu.memory_space<vmem>>
    %100 = tpu.memref_squeeze %99 : memref<1x128xf32, #tpu.memory_space<vmem>> -> memref<128xf32, #tpu.memory_space<vmem>>
    %101 = tpu.memref_slice %arg4[%c0_i32_54] : memref<1x!tpu.dma_semaphore, #tpu.memory_space<semaphore_mem>> -> memref<1x!tpu.dma_semaphore, #tpu.memory_space<semaphore_mem>>
    %102 = tpu.memref_squeeze %101 : memref<1x!tpu.dma_semaphore, #tpu.memory_space<semaphore_mem>> -> memref<!tpu.dma_semaphore, #tpu.memory_space<semaphore_mem>>
    tpu.wait_dma2 semaphore(%102 : memref<!tpu.dma_semaphore, #tpu.memory_space<semaphore_mem>>) src(%98 : memref<128xf32, #tpu.memory_space<any>>) dst(%100 : memref<128xf32, #tpu.memory_space<vmem>>)
    %c0_i32_57 = arith.constant 0 : i32
    %c5_i32_58 = arith.constant 5 : i32
    %c0_i32_59 = arith.constant 0 : i32
    %c0_i32_60 = arith.constant 0 : i32
    %103 = tpu.memref_slice %arg2[%c0_i32_57, %c0_i32_60] : memref<256x128xf32, #tpu.memory_space<any>> -> memref<1x128xf32, #tpu.memory_space<any>>
    %104 = tpu.memref_squeeze %103 : memref<1x128xf32, #tpu.memory_space<any>> -> memref<128xf32, #tpu.memory_space<any>>
    %c0_i32_61 = arith.constant 0 : i32
    %105 = tpu.memref_slice %arg3[%c5_i32_58, %c0_i32_61] : memref<8x128xf32, #tpu.memory_space<vmem>> -> memref<1x128xf32, #tpu.memory_space<vmem>>
    %106 = tpu.memref_squeeze %105 : memref<1x128xf32, #tpu.memory_space<vmem>> -> memref<128xf32, #tpu.memory_space<vmem>>
    %107 = tpu.memref_slice %arg4[%c0_i32_59] : memref<1x!tpu.dma_semaphore, #tpu.memory_space<semaphore_mem>> -> memref<1x!tpu.dma_semaphore, #tpu.memory_space<semaphore_mem>>
    %108 = tpu.memref_squeeze %107 : memref<1x!tpu.dma_semaphore, #tpu.memory_space<semaphore_mem>> -> memref<!tpu.dma_semaphore, #tpu.memory_space<semaphore_mem>>
    tpu.wait_dma2 semaphore(%108 : memref<!tpu.dma_semaphore, #tpu.memory_space<semaphore_mem>>) src(%104 : memref<128xf32, #tpu.memory_space<any>>) dst(%106 : memref<128xf32, #tpu.memory_space<vmem>>)
    %c0_i32_62 = arith.constant 0 : i32
    %c6_i32_63 = arith.constant 6 : i32
    %c0_i32_64 = arith.constant 0 : i32
    %c0_i32_65 = arith.constant 0 : i32
    %109 = tpu.memref_slice %arg2[%c0_i32_62, %c0_i32_65] : memref<256x128xf32, #tpu.memory_space<any>> -> memref<1x128xf32, #tpu.memory_space<any>>
    %110 = tpu.memref_squeeze %109 : memref<1x128xf32, #tpu.memory_space<any>> -> memref<128xf32, #tpu.memory_space<any>>
    %c0_i32_66 = arith.constant 0 : i32
    %111 = tpu.memref_slice %arg3[%c6_i32_63, %c0_i32_66] : memref<8x128xf32, #tpu.memory_space<vmem>> -> memref<1x128xf32, #tpu.memory_space<vmem>>
    %112 = tpu.memref_squeeze %111 : memref<1x128xf32, #tpu.memory_space<vmem>> -> memref<128xf32, #tpu.memory_space<vmem>>
    %113 = tpu.memref_slice %arg4[%c0_i32_64] : memref<1x!tpu.dma_semaphore, #tpu.memory_space<semaphore_mem>> -> memref<1x!tpu.dma_semaphore, #tpu.memory_space<semaphore_mem>>
    %114 = tpu.memref_squeeze %113 : memref<1x!tpu.dma_semaphore, #tpu.memory_space<semaphore_mem>> -> memref<!tpu.dma_semaphore, #tpu.memory_space<semaphore_mem>>
    tpu.wait_dma2 semaphore(%114 : memref<!tpu.dma_semaphore, #tpu.memory_space<semaphore_mem>>) src(%110 : memref<128xf32, #tpu.memory_space<any>>) dst(%112 : memref<128xf32, #tpu.memory_space<vmem>>)
    %c0_i32_67 = arith.constant 0 : i32
    %c7_i32_68 = arith.constant 7 : i32
    %c0_i32_69 = arith.constant 0 : i32
    %c0_i32_70 = arith.constant 0 : i32
    %115 = tpu.memref_slice %arg2[%c0_i32_67, %c0_i32_70] : memref<256x128xf32, #tpu.memory_space<any>> -> memref<1x128xf32, #tpu.memory_space<any>>
    %116 = tpu.memref_squeeze %115 : memref<1x128xf32, #tpu.memory_space<any>> -> memref<128xf32, #tpu.memory_space<any>>
    %c0_i32_71 = arith.constant 0 : i32
    %117 = tpu.memref_slice %arg3[%c7_i32_68, %c0_i32_71] : memref<8x128xf32, #tpu.memory_space<vmem>> -> memref<1x128xf32, #tpu.memory_space<vmem>>
    %118 = tpu.memref_squeeze %117 : memref<1x128xf32, #tpu.memory_space<vmem>> -> memref<128xf32, #tpu.memory_space<vmem>>
    %119 = tpu.memref_slice %arg4[%c0_i32_69] : memref<1x!tpu.dma_semaphore, #tpu.memory_space<semaphore_mem>> -> memref<1x!tpu.dma_semaphore, #tpu.memory_space<semaphore_mem>>
    %120 = tpu.memref_squeeze %119 : memref<1x!tpu.dma_semaphore, #tpu.memory_space<semaphore_mem>> -> memref<!tpu.dma_semaphore, #tpu.memory_space<semaphore_mem>>
    tpu.wait_dma2 semaphore(%120 : memref<!tpu.dma_semaphore, #tpu.memory_space<semaphore_mem>>) src(%116 : memref<128xf32, #tpu.memory_space<any>>) dst(%118 : memref<128xf32, #tpu.memory_space<vmem>>)
    return
  }
  func.func @transform_1(%arg0: i32, %arg1: memref<16xi32, #tpu.memory_space<smem>>) -> (i32, i32) {
    %c0_i32 = arith.constant 0 : i32
    %c0_i32_0 = arith.constant 0 : i32
    return %arg0, %c0_i32 : i32, i32
  }
}

</mosaic_0001>

<bundles_post_ra>
// kernel: tpu_custom_call.1
= control target key start
LH: loop header
LB: loop body
LE: loop exit
PB: predicated region body
PF: predicated region fallthrough
CT: control target
= control target key end

     0   :  { %s1011_s0 = inlined_call_operand.hbm [shape: s32[16], index: 0, kind: input, shape index: {}]   ;;  %s1012_s1 = inlined_call_operand.hbm [shape: f32[256,128], index: 1, kind: input, shape index: {}]   ;;  %s1013_s2 = inlined_call_operand.hbm [shape: f32[16,128], index: 2, kind: output, shape index: {}]  }
   0x1   :  { %s354_s11 = scalar_lea.hbm %s1011_s0, 16 }
   0x2   :  { %p355_p0 = scmp.ne.s32.totalorder %s1011_s0, %s354_s11  ;;  %p358_p1 = scmp.lt.u32.totalorder %s354_s11, %s1011_s0 }
   0x4   :  { %p360_p2 = pnand %p358_p1, %p355_p0 }
   0x6   :  { %363 = shalt.err (!%p360_p2)  }
   0x7   :  { %s652_s16 = smov [#allocation4]  }
   0x8   :  { %8 = dma.hbm_to_smem %s1011_s0, 16, %s652_s16, [#allocation3] }
   0x9   :  { %630 = dma.done.wait [#allocation3], 16 }
   0xa   :  { %631 = vsyncadd [#allocation3], 4294967280 }
   0xb   :  { %10 = sfence }
   0xc   :  { %11 = vsyncpa [#allocation6], 0 }
   0xd   :  { %13 = vsyncpa [#allocation6 + $0x1], 0  ;;  %s681_s19 = smov 0   ;;  %s683_s20 = smov 0  }
   0xe   :  { %s685_s21 = smov 0  }
   0xf LB: > { %s274_s0 = sadd.s32 4294967295, %s650_s21   ;;  %s698_s22 = sadd.s32 1, %s650_s21   ;;  %s650_s21 = sphi %s685_s21, %s1026_s21   ;;  %s646_s20 = sphi %s683_s20, %s1025_s20   ;;  %s642_s19 = sphi %s681_s19, %s1024_s19  }
  0x10   : > { %s22_s23 = ssub.s32 %s650_s21, %s698_s22  ;;  %s25_s24 = sadd.s32 1, %s646_s20 }
  0x11   : > { %p23_p3 = scmp.eq.s32.totalorder %s22_s23, 0  ;;  %p275_p4 = scmp.ne.s32.totalorder %s22_s23, 0 }
  0x12   : > { %p29_p5 = scmp.eq.s32.totalorder %s650_s21, 1  ;;  %p34_p6 = scmp.ne.s32.totalorder %s646_s20, %s642_s19 }
  0x13   : > { %s707_s25 = scalar_select %p23_p3, %s646_s20, %s25_s24  }
  0x14   : > { %p709_p7 = por %p275_p4, %p29_p5  ;;  %p35_p8 = scmp.eq.s32.totalorder %s274_s0, 1 }
  0x15   : > { %p327_p9 = scmp.lt.s32.totalorder %s650_s21, 2  ;;  %s49_s28 = sand.u32 1, %s646_s20  }
  0x16   : > { %s1016_s26 = scalar_select %p709_p7, 1, 0 }
  0x17   : > { %p714_p10 = por %p35_p8, %p34_p6  ;;  %s277_s29 = sshll.u32 %s49_s28, 3 }
  0x18   : > { %s722_s30 = sshll.u32 %s650_s21, 3  ;;  %s730_s6 = scalar_lea.vmem [#allocation5], %s277_s29 }
  0x19   : > { %s1017_s27 = scalar_select %p714_p10, 1, 0 }
  0x1a   : > { %s67_s3 = sadd.s32 1, %s722_s30  ;;  %s63_s7 = sshll.u32 %s730_s6, 4  ;;  %s734_s7 = int_to_ptr.vmem [resolvable:$true] %s63_s7 }
  0x1b   : > { %s295_s4 = scalar_select %p327_p9, [#allocation4], [#allocation25] }
  0x1c   : > { %s296_s5 = scalar_select %p327_p9, %s722_s30, 0 }
  0x1d   : > { %s71_s8 = scalar_lea.vmem %s730_s6, 1 [#allocation5]  ;;  %s1028_s3 = smov (!%p327_p9, %s67_s3), 0 }
  0x1e   : > { %s53_s9 = sld [smem:[%s295_s4 + %s296_s5]]  ;;  %s79_s11 = sshll.u32 %s71_s8, 4  ;;  %s743_s11 = int_to_ptr.vmem [resolvable:$true] %s79_s11 }
  0x1f   : > { %s298_s10 = scalar_select %p327_p9, [#allocation4], [#allocation26] }
  0x20   : > { %s83_s12 = sadd.s32 2, %s722_s30  ;;  %s87_s16 = scalar_lea.vmem %s730_s6, 2 [#allocation5] }
  0x21   : > { %s741_s13 = sld [smem:[%s298_s10 + %s1028_s3]]  ;;  %s95_s23 = sshll.u32 %s87_s16, 4  ;;  %s787_s23 = int_to_ptr.vmem [resolvable:$true] %s95_s23 }
  0x22   : > { %s747_s14 = scalar_select %p327_p9, [#allocation4], [#allocation27] }
  0x23   : > { %s758_s4 = scalar_lea.hbm %s1012_s1, 4096 }
  0x24   : > { %s279_s15 = sshll.u32 %s53_s9, 4 }
  0x25   : > { %s55_s0 = scalar_lea.hbm %s1012_s1, %s279_s15 }
  0x26   : > { %s364_s24 = scalar_lea.hbm %s55_s0, 16  ;;  %p369_p0 = scmp.lt.u32.totalorder %s55_s0, %s1012_s1 }
  0x27   : > { %p365_p11 = scmp.ne.s32.totalorder %s55_s0, %s364_s24  ;;  %p370_p1 = scmp.lt.u32.totalorder %s758_s4, %s364_s24 }
  0x28   : > { %p372_p3 = scmp.lt.u32.totalorder %s364_s24, %s55_s0 }
  0x29   : > { %p366_p12 = pnand %p365_p11, %p327_p9  ;;  %p371_p2 = por %p370_p1, %p369_p0 }
  0x2b   : > { %p367_p13 = pneg %p366_p12  ;;  %p373_p4 = por %p372_p3, %p371_p2 }
  0x2d   : > { %p374_p5 = pnand %p373_p4, %p367_p13 }
  0x2f   : > { %377 = shalt.err (!%p374_p5)  }
  0x30   : > { %s378_s9 = scalar_lea.vmem %s734_s7, 16  ;;  %s653_s10 = smov [#allocation5]  }
  0x31   : > { %p379_p6 = scmp.ne.s32.totalorder %s734_s7, %s378_s9  ;;  %s382_s15 = sshll.u32 %s653_s10, 4  ;;  %s768_s15 = int_to_ptr.vmem [resolvable:$false] %s382_s15 }
  0x32   : > { %s771_s16 = scalar_lea.vmem %s768_s15, 256  ;;  %p1014_p12 = scmp.lt.s32.totalorder %s734_s7, %s768_s15 }
  0x33   : > { %p380_p8 = pnand %p379_p6, %p327_p9  ;;  %p386_p13 = scmp.lt.s32.totalorder %s771_s16, %s378_s9 }
  0x35   : > { %p381_p11 = pneg %p380_p8  ;;  %p387_p0 = por %p386_p13, %p1014_p12 }
  0x37   : > { %p388_p1 = pnand %p387_p0, %p381_p11 }
  0x39   : > { %391 = shalt.err (!%p388_p1)  }
  0x3a   : > { %297 = dma.hbm_to_vmem [thread:$0]  (%p327_p9), %s55_s0, 16, %s734_s7, [#allocation2] }
  0x3b   : > { %s1030_s12 = smov (!%p327_p9, %s83_s12), 0  ;;  %s280_s17 = sshll.u32 %s741_s13, 4 }
  0x3c   : > { %s70_s29 = scalar_lea.hbm %s1012_s1, %s280_s17  ;;  %s793_s3 = sld [smem:[%s747_s14 + %s1030_s12]] }
  0x3d   : > { %s392_s5 = scalar_lea.hbm %s70_s29, 16  ;;  %p397_p5 = scmp.lt.u32.totalorder %s70_s29, %s1012_s1 }
  0x3e   : > { %p393_p2 = scmp.ne.s32.totalorder %s70_s29, %s392_s5  ;;  %p398_p6 = scmp.lt.u32.totalorder %s758_s4, %s392_s5 }
  0x3f   : > { %p400_p11 = scmp.lt.u32.totalorder %s392_s5, %s70_s29 }
  0x40   : > { %p394_p3 = pnand %p393_p2, %p327_p9  ;;  %p399_p8 = por %p398_p6, %p397_p5 }
  0x42   : > { %p395_p4 = pneg %p394_p3  ;;  %p401_p13 = por %p400_p11, %p399_p8 }
  0x44   : > { %p402_p0 = pnand %p401_p13, %p395_p4 }
  0x46   : > { %405 = shalt.err (!%p402_p0)  }
  0x47   : > { %s406_s12 = scalar_lea.vmem %s743_s11, 16  ;;  %p413_p12 = scmp.lt.s32.totalorder %s743_s11, %s768_s15 }
  0x48   : > { %p407_p1 = scmp.ne.s32.totalorder %s743_s11, %s406_s12  ;;  %p414_p10 = scmp.lt.s32.totalorder %s771_s16, %s406_s12 }
  0x4a   : > { %p408_p2 = pnand %p407_p1, %p327_p9  ;;  %p415_p7 = por %p414_p10, %p413_p12 }
  0x4c   : > { %p409_p3 = pneg %p408_p2 }
  0x4e   : > { %p416_p5 = pnand %p415_p7, %p409_p3 }
  0x50   : > { %419 = shalt.err (!%p416_p5)  }
  0x51   : > { %300 = dma.hbm_to_vmem [thread:$0]  (%p327_p9), %s70_s29, 16, %s743_s11, [#allocation2] }
  0x52   : > { %s99_s13 = sadd.s32 3, %s722_s30  ;;  %s103_s14 = scalar_lea.vmem %s730_s6, 3 [#allocation5] }
  0x53   : > { %s304_s0 = scalar_select %p327_p9, [#allocation4], [#allocation28] }
  0x54   : > { %s1032_s13 = smov (!%p327_p9, %s99_s13), 0  ;;  %s111_s10 = sshll.u32 %s103_s14, 4  ;;  %s824_s10 = int_to_ptr.vmem [resolvable:$true] %s111_s10 }
  0x55   : > { %s115_s17 = sadd.s32 4, %s722_s30  ;;  %s281_s18 = sshll.u32 %s793_s3, 4 }
  0x56   : > { %s819_s24 = sld [smem:[%s304_s0 + %s1032_s13]]  ;;  %s86_s9 = scalar_lea.hbm %s1012_s1, %s281_s18 }
  0x57   : > { %s420_s12 = scalar_lea.hbm %s86_s9, 16  ;;  %p425_p4 = scmp.lt.u32.totalorder %s86_s9, %s1012_s1 }
  0x58   : > { %p421_p7 = scmp.ne.s32.totalorder %s86_s9, %s420_s12  ;;  %p426_p6 = scmp.lt.u32.totalorder %s758_s4, %s420_s12 }
  0x59   : > { %p428_p11 = scmp.lt.u32.totalorder %s420_s12, %s86_s9 }
  0x5a   : > { %p422_p10 = pnand %p421_p7, %p327_p9  ;;  %p427_p8 = por %p426_p6, %p425_p4 }
  0x5c   : > { %p423_p12 = pneg %p422_p10  ;;  %p429_p13 = por %p428_p11, %p427_p8 }
  0x5e   : > { %p430_p0 = pnand %p429_p13, %p423_p12 }
  0x60   : > { %433 = shalt.err (!%p430_p0)  }
  0x61   : > { %s434_s3 = scalar_lea.vmem %s787_s23, 16  ;;  %p441_p5 = scmp.lt.s32.totalorder %s787_s23, %s768_s15 }
  0x62   : > { %p435_p1 = scmp.ne.s32.totalorder %s787_s23, %s434_s3  ;;  %p442_p7 = scmp.lt.s32.totalorder %s771_s16, %s434_s3 }
  0x64   : > { %p436_p2 = pnand %p435_p1, %p327_p9  ;;  %p443_p10 = por %p442_p7, %p441_p5 }
  0x66   : > { %p437_p3 = pneg %p436_p2 }
  0x68   : > { %p444_p4 = pnand %p443_p10, %p437_p3 }
  0x6a   : > { %447 = shalt.err (!%p444_p4)  }
  0x6b   : > { %303 = dma.hbm_to_vmem [thread:$0]  (%p327_p9), %s86_s9, 16, %s787_s23, [#allocation2] }
  0x6c   : > { %s307_s13 = scalar_select %p327_p9, [#allocation4], [#allocation29] }
  0x6d   : > { %s1034_s17 = smov (!%p327_p9, %s115_s17), 0  ;;  %s119_s14 = scalar_lea.vmem %s730_s6, 4 [#allocation5] }
  0x6e   : > { %s131_s0 = sadd.s32 5, %s722_s30  ;;  %s282_s18 = sshll.u32 %s819_s24, 4 }
  0x6f   : > { %s849_s5 = sld [smem:[%s307_s13 + %s1034_s17]]  ;;  %s102_s11 = scalar_lea.hbm %s1012_s1, %s282_s18 }
  0x70   : > { %s127_s29 = sshll.u32 %s119_s14, 4  ;;  %s448_s3 = scalar_lea.hbm %s102_s11, 16  ;;  %s128_s29 = int_to_ptr.vmem [resolvable:$true] %s127_s29 }
  0x71   : > { %p449_p12 = scmp.ne.s32.totalorder %s102_s11, %s448_s3  ;;  %p453_p11 = scmp.lt.u32.totalorder %s102_s11, %s1012_s1 }
  0x72   : > { %p454_p13 = scmp.lt.u32.totalorder %s758_s4, %s448_s3  ;;  %p456_p1 = scmp.lt.u32.totalorder %s448_s3, %s102_s11 }
  0x73   : > { %p450_p6 = pnand %p449_p12, %p327_p9 }
  0x74   : > { %p455_p0 = por %p454_p13, %p453_p11 }
  0x75   : > { %p451_p8 = pneg %p450_p6 }
  0x76   : > { %p457_p2 = por %p456_p1, %p455_p0 }
  0x78   : > { %p458_p3 = pnand %p457_p2, %p451_p8 }
  0x7a   : > { %461 = shalt.err (!%p458_p3)  }
  0x7b   : > { %s462_s17 = scalar_lea.vmem %s824_s10, 16  ;;  %p469_p4 = scmp.lt.s32.totalorder %s824_s10, %s768_s15 }
  0x7c   : > { %p463_p5 = scmp.ne.s32.totalorder %s824_s10, %s462_s17  ;;  %p470_p12 = scmp.lt.s32.totalorder %s771_s16, %s462_s17 }
  0x7e   : > { %p464_p7 = pnand %p463_p5, %p327_p9  ;;  %p471_p6 = por %p470_p12, %p469_p4 }
  0x80   : > { %p465_p10 = pneg %p464_p7 }
  0x82   : > { %p472_p11 = pnand %p471_p6, %p465_p10 }
  0x84   : > { %475 = shalt.err (!%p472_p11)  }
  0x85   : > { %306 = dma.hbm_to_vmem [thread:$0]  (%p327_p9), %s102_s11, 16, %s824_s10, [#allocation2] }
  0x86   : > { %s135_s24 = scalar_lea.vmem %s730_s6, 5 [#allocation5]  ;;  %s1036_s0 = smov (!%p327_p9, %s131_s0), 0 }
  0x87   : > { %s310_s13 = scalar_select %p327_p9, [#allocation4], [#allocation30] }
  0x88   : > { %s283_s14 = sshll.u32 %s849_s5, 4  ;;  %s143_s18 = sshll.u32 %s135_s24, 4  ;;  %s893_s18 = int_to_ptr.vmem [resolvable:$true] %s143_s18 }
  0x89   : > { %s118_s3 = scalar_lea.hbm %s1012_s1, %s283_s14  ;;  %s879_s23 = sld [smem:[%s310_s13 + %s1036_s0]] }
  0x8a   : > { %s476_s9 = scalar_lea.hbm %s118_s3, 16  ;;  %p481_p1 = scmp.lt.u32.totalorder %s118_s3, %s1012_s1 }
  0x8b   : > { %p477_p8 = scmp.ne.s32.totalorder %s118_s3, %s476_s9  ;;  %p482_p2 = scmp.lt.u32.totalorder %s758_s4, %s476_s9 }
  0x8c   : > { %p484_p5 = scmp.lt.u32.totalorder %s476_s9, %s118_s3 }
  0x8d   : > { %p478_p13 = pnand %p477_p8, %p327_p9  ;;  %p483_p3 = por %p482_p2, %p481_p1 }
  0x8f   : > { %p479_p0 = pneg %p478_p13  ;;  %p485_p7 = por %p484_p5, %p483_p3 }
  0x91   : > { %p486_p10 = pnand %p485_p7, %p479_p0 }
  0x93   : > { %489 = shalt.err (!%p486_p10)  }
  0x94   : > { %s490_s5 = scalar_lea.vmem %s128_s29, 16  ;;  %p497_p11 = scmp.lt.s32.totalorder %s128_s29, %s768_s15 }
  0x95   : > { %p491_p4 = scmp.ne.s32.totalorder %s128_s29, %s490_s5  ;;  %p498_p8 = scmp.lt.s32.totalorder %s771_s16, %s490_s5 }
  0x97   : > { %p492_p12 = pnand %p491_p4, %p327_p9  ;;  %p499_p13 = por %p498_p8, %p497_p11 }
  0x99   : > { %p493_p6 = pneg %p492_p12 }
  0x9b   : > { %p500_p1 = pnand %p499_p13, %p493_p6 }
  0x9d   : > { %503 = shalt.err (!%p500_p1)  }
  0x9e   : > { %309 = dma.hbm_to_vmem [thread:$0]  (%p327_p9), %s118_s3, 16, %s128_s29, [#allocation2] }
  0x9f   : > { %s147_s0 = sadd.s32 6, %s722_s30  ;;  %s151_s24 = scalar_lea.vmem %s730_s6, 6 [#allocation5] }
  0xa0   : > { %s313_s17 = scalar_select %p327_p9, [#allocation4], [#allocation31] }
  0xa1   : > { %s1038_s0 = smov (!%p327_p9, %s147_s0), 0  ;;  %s163_s13 = sadd.s32 7, %s722_s30 }
  0xa2   : > { %s284_s14 = sshll.u32 %s879_s23, 4  ;;  %s903_s8 = sld [smem:[%s313_s17 + %s1038_s0]] }
  0xa3   : > { %s134_s10 = scalar_lea.hbm %s1012_s1, %s284_s14  ;;  %s159_s11 = sshll.u32 %s151_s24, 4  ;;  %s160_s11 = int_to_ptr.vmem [resolvable:$true] %s159_s11 }
  0xa4   : > { %s504_s5 = scalar_lea.hbm %s134_s10, 16  ;;  %p509_p5 = scmp.lt.u32.totalorder %s134_s10, %s1012_s1 }
  0xa5   : > { %p505_p0 = scmp.ne.s32.totalorder %s134_s10, %s504_s5  ;;  %p510_p7 = scmp.lt.u32.totalorder %s758_s4, %s504_s5 }
  0xa6   : > { %p512_p4 = scmp.lt.u32.totalorder %s504_s5, %s134_s10 }
  0xa7   : > { %p506_p2 = pnand %p505_p0, %p327_p9  ;;  %p511_p10 = por %p510_p7, %p509_p5 }
  0xa9   : > { %p507_p3 = pneg %p506_p2  ;;  %p513_p12 = por %p512_p4, %p511_p10 }
  0xab   : > { %p514_p6 = pnand %p513_p12, %p507_p3 }
  0xad   : > { %517 = shalt.err (!%p514_p6)  }
  0xae   : > { %s518_s30 = scalar_lea.vmem %s893_s18, 16  ;;  %p525_p1 = scmp.lt.s32.totalorder %s893_s18, %s768_s15 }
  0xaf   : > { %p519_p11 = scmp.ne.s32.totalorder %s893_s18, %s518_s30  ;;  %p526_p0 = scmp.lt.s32.totalorder %s771_s16, %s518_s30 }
  0xb1   : > { %p520_p8 = pnand %p519_p11, %p327_p9  ;;  %p527_p2 = por %p526_p0, %p525_p1 }
  0xb3   : > { %p521_p13 = pneg %p520_p8 }
  0xb5   : > { %p528_p5 = pnand %p527_p2, %p521_p13 }
  0xb7   : > { %531 = shalt.err (!%p528_p5)  }
  0xb8   : > { %312 = dma.hbm_to_vmem [thread:$0]  (%p327_p9), %s134_s10, 16, %s893_s18, [#allocation2] }
  0xb9   : > { %s316_s23 = scalar_select %p327_p9, [#allocation4], [#allocation32] }
  0xba   : > { %s1040_s13 = smov (!%p327_p9, %s163_s13), 0  ;;  %s285_s0 = sshll.u32 %s903_s8, 4 }
  0xbb   : > { %s167_s17 = scalar_lea.vmem %s730_s6, 7 [#allocation5]  ;;  %s150_s12 = scalar_lea.hbm %s1012_s1, %s285_s0 }
  0xbc   : > { %s164_s9 = sld [smem:[%s316_s23 + %s1040_s13]]  ;;  %s532_s5 = scalar_lea.hbm %s150_s12, 16 }
  0xbd   : > { %p533_p3 = scmp.ne.s32.totalorder %s150_s12, %s532_s5  ;;  %p537_p4 = scmp.lt.u32.totalorder %s150_s12, %s1012_s1 }
  0xbe   : > { %p538_p12 = scmp.lt.u32.totalorder %s758_s4, %s532_s5  ;;  %p540_p11 = scmp.lt.u32.totalorder %s532_s5, %s150_s12 }
  0xbf   : > { %p534_p7 = pnand %p533_p3, %p327_p9 }
  0xc0   : > { %p539_p6 = por %p538_p12, %p537_p4 }
  0xc1   : > { %p535_p10 = pneg %p534_p7 }
  0xc2   : > { %p541_p8 = por %p540_p11, %p539_p6 }
  0xc4   : > { %p542_p13 = pnand %p541_p8, %p535_p10 }
  0xc6   : > { %545 = shalt.err (!%p542_p13)  }
  0xc7   : > { %s546_s6 = scalar_lea.vmem %s160_s11, 16  ;;  %p553_p5 = scmp.lt.s32.totalorder %s160_s11, %s768_s15 }
  0xc8   : > { %p547_p1 = scmp.ne.s32.totalorder %s160_s11, %s546_s6  ;;  %p554_p3 = scmp.lt.s32.totalorder %s771_s16, %s546_s6 }
  0xca   : > { %p548_p0 = pnand %p547_p1, %p327_p9  ;;  %p555_p7 = por %p554_p3, %p553_p5 }
  0xcc   : > { %p549_p2 = pneg %p548_p0 }
  0xce   : > { %p556_p4 = pnand %p555_p7, %p549_p2 }
  0xd0   : > { %559 = shalt.err (!%p556_p4)  }
  0xd1   : > { %315 = dma.hbm_to_vmem [thread:$0]  (%p327_p9), %s150_s12, 16, %s160_s11, [#allocation2] }
  0xd2   : > { %s175_s18 = sshll.u32 %s167_s17, 4  ;;  %s286_s13 = sshll.u32 %s164_s9, 4  ;;  %s176_s18 = int_to_ptr.vmem [resolvable:$true] %s175_s18 }
  0xd3   : > { %s166_s30 = scalar_lea.hbm %s1012_s1, %s286_s13 }
  0xd4   : > { %s560_s23 = scalar_lea.hbm %s166_s30, 16  ;;  %p565_p11 = scmp.lt.u32.totalorder %s166_s30, %s1012_s1 }
  0xd5   : > { %p561_p10 = scmp.ne.s32.totalorder %s166_s30, %s560_s23  ;;  %p566_p8 = scmp.lt.u32.totalorder %s758_s4, %s560_s23 }
  0xd6   : > { %p568_p1 = scmp.lt.u32.totalorder %s560_s23, %s166_s30 }
  0xd7   : > { %p562_p12 = pnand %p561_p10, %p327_p9  ;;  %p567_p13 = por %p566_p8, %p565_p11 }
  0xd9   : > { %p563_p6 = pneg %p562_p12  ;;  %p569_p0 = por %p568_p1, %p567_p13 }
  0xdb   : > { %p570_p2 = pnand %p569_p0, %p563_p6 }
  0xdd   : > { %573 = shalt.err (!%p570_p2)  }
  0xde   : > { %s574_s11 = scalar_lea.vmem %s176_s18, 16  ;;  %p581_p4 = scmp.lt.s32.totalorder %s176_s18, %s768_s15 }
  0xdf   : > { %p575_p5 = scmp.ne.s32.totalorder %s176_s18, %s574_s11  ;;  %p582_p10 = scmp.lt.s32.totalorder %s771_s16, %s574_s11 }
  0xe1   : > { %p576_p3 = pnand %p575_p5, %p327_p9  ;;  %p583_p12 = por %p582_p10, %p581_p4 }
  0xe3   : > { %p577_p7 = pneg %p576_p3 }
  0xe5   : > { %p584_p8 = pnand %p583_p12, %p577_p7 }
  0xe7   : > { %587 = shalt.err (!%p584_p8)  }
  0xe8   : > { %318 = dma.hbm_to_vmem [thread:$0]  (%p327_p9), %s166_s30, 16, %s176_s18, [#allocation2] }
  0xe9   : > { %633 = dma.done.wait (%p327_p9), [#allocation2], 128 }
  0xea   : > { %635 = vsyncadd (%p327_p9), [#allocation2], 4294967168  ;;  %s288_s4 = sshll.u32 %s650_s21, 7  ;;  %p1018_p6 = scmp.ne.s32.totalorder %s1016_s26, 0 }
  0xeb   : > { %s207_s12 = scalar_lea.hbm %s1013_s2, %s288_s4  ;;  %s221_s5 = sand.u32 1, %s642_s19  }
  0xec   : > { %p972_p11 = pnand %p327_p9, %p1018_p6  ;;  %s196_s29 = scalar_lea.sflag [#allocation6], %s49_s28 }
  0xed   : > { %s588_s3 = scalar_lea.vmem %s734_s7, 128  ;;  %p1020_p7 = scmp.lt.s32.totalorder %s734_s7, %s768_s15 }
  0xee   : > { %s1019_s9 = scalar_select %p972_p11, 1, 0 }
  0xef   : > { %p589_p1 = scmp.ne.s32.totalorder %s734_s7, %s588_s3  ;;  %p590_p0 = pneg %p972_p11 }
  0xf0   : > { %p597_p3 = scmp.lt.s32.totalorder %s771_s16, %s588_s3 }
  0xf1   : > { %p591_p2 = pnand %p590_p0, %p589_p1 }
  0xf2   : > { %p598_p4 = por %p597_p3, %p1020_p7 }
  0xf3   : > { %p592_p5 = pneg %p591_p2 }
  0xf5   : > { %p599_p10 = pnand %p598_p4, %p592_p5 }
  0xf7   : > { %602 = shalt.err (!%p599_p10)
}
  0xf8   : > { %s603_s26 = scalar_lea.hbm %s207_s12, 128  ;;  %s608_s19 = scalar_lea.hbm %s1013_s2, 256 }
  0xf9   : > { %p604_p9 = scmp.ne.s32.totalorder %s207_s12, %s603_s26  ;;  %p609_p6 = scmp.lt.u32.totalorder %s207_s12, %s1013_s2 }
  0xfa   : > { %p610_p13 = scmp.lt.u32.totalorder %s608_s19, %s603_s26  ;;  %p612_p2 = scmp.lt.u32.totalorder %s603_s26, %s207_s12 }
  0xfb   : > { %p606_p12 = pnand %p604_p9, %p590_p0 }
  0xfc   : > { %p611_p1 = por %p610_p13, %p609_p6 }
  0xfd   : > { %p607_p8 = pneg %p606_p12 }
  0xfe   : > { %p613_p11 = por %p612_p2, %p611_p1 }
 0x100   : > { %p614_p3 = pnand %p613_p11, %p607_p8 }
 0x102   : > { %617 = shalt.err (!%p614_p3)
}
 0x103   : > { %p1021_p5 = scmp.ne.s32.totalorder %s1019_s9, 0  ;;  %p1022_p0 = scmp.ne.s32.totalorder %s1017_s27, 0 }
 0x104   : > { %p1023_p7 = scmp.ge.s32.totalorder %s650_s21, 1  ;;  %s222_s15 = scalar_lea.sflag [#allocation6], %s221_s5 }
 0x105   : > { %322 = dma.vmem_to_hbm [thread:$0]  (!%p1021_p5), %s734_s7, 128, %s207_s12, %s196_s29  }
 0x106   : > { %p324_p4 = pnand %p1023_p7, %p1022_p0 }
 0x108   : > { %637 = dma.done.wait (!%p324_p4), %s222_s15, 128  }
 0x109   : > { %639 = vsyncadd (!%p324_p4), %s222_s15, 4294967168  ;;  %p16_p13 = scmp.ge.s32.totalorder %s698_s22, 3   ;;  %s1024_s19 = smov %s646_s20 }
 0x10a   : > { %s1025_s20 = smov %s707_s25  ;;  %s1026_s21 = smov %s698_s22 }
 0x10b   :  { %18 = sbr.rel (!%p16_p13) target bundleno = 15 (0xf), region = 91 }
 0x112   :  { %227 = vsyncpa [#allocation6], 1 }
 0x113   :  { %229 = vsyncpa [#allocation6 + $0x1], 1 }
 0x114   :  { %230 = vsyncmov [#allocation2] }
 0x117   :  { %s231_s21 = vpop.sfrf %230 }
 0x118   :  { %p291_p11 = scmp.ne.s32.totalorder %s231_s21, 0 }
 0x11a   :  { %235 = shalt.err (%p291_p11)  }

</bundles_post_ra>
